<compile_context>
chip_gen: v7x
topology: tpu7x:2x2x1
jax: 0.10.0
libtpu: 0.0.40
codegen_flags: <defaults>
</compile_context>

<pallas_src>
import jax
import jax.numpy as jnp
from jax.experimental import pallas as pl
from jax.experimental.pallas import tpu as pltpu


def _round_up(a, b):
    return ((a + b - 1) // b) * b


# ----------------------------- Pallas kernel ------------------------------ #
def _dilation_kernel(
    x_ref,       # (1, Cin, T)     pixel tile: channels on sublanes, pixels on lanes
    w_all_ref,   # (3*Cin, Cin)    folded conv+BN weights of the 3 branches
    b_all_ref,   # (3*Cin, 1)      folded BN shifts of the 3 branches (f32)
    alpha_ref,   # (3*Cin, 1)      per-channel PReLU slopes (f32)
    wf_ref,      # (Cout, 3*Cin)   folded final conv+BN weight
    bf_ref,      # (Cout, 1)       folded final conv-bias + BN shift (f32)
    o_ref,       # (1, Cout, T)
):
    x = x_ref[0]                                                   # (Cin, T)

    # Fused three-branch 1x1 conv (+BN) as one matmul; f32 accumulation.
    h = jnp.dot(w_all_ref[...], x, preferred_element_type=jnp.float32)
    h = h + b_all_ref[...]                                         # (3Cin, T) f32
    # PReLU with per-row slope (lane broadcast; plain VPU select, f32 math).
    h = jnp.where(h > 0.0, h, alpha_ref[...] * h)

    # Final 1x1 conv over the (implicitly) concatenated channels.
    y = jnp.dot(wf_ref[...], h.astype(wf_ref.dtype),
                preferred_element_type=jnp.float32)
    y = y + bf_ref[...]                                            # (Cout, T) f32
    o_ref[0] = y.astype(o_ref.dtype)


# ------------------------------- wrapper ----------------------------------- #
def _vmem_budget_bytes():
    """~3/4 of physical VMEM: ~48 MiB on v7x (64 MiB/TC), ~96 MiB on v5e/v6e."""
    try:
        cap = int(pltpu.get_tpu_info().vmem_capacity_bytes)
    except Exception:
        cap = 128 << 20
    return (cap * 3) // 4


def dilation_forward(x_nchw, params, *, out_dtype=None, tile_hw=None):
    """Eval-mode Dilation forward.  x_nchw: (N, Cin, H, W) -> (N, Cout, H, W).

    Compute/IO dtype for x is x_nchw.dtype (hand in bf16 activations to halve
    the input HBM stream); accumulation, bias and PReLU math stay f32.
    `out_dtype` defaults to the input dtype.
    """
    N, Cin, H, W = x_nchw.shape
    Cout = params["bf"].shape[0]
    C3 = 3 * Cin
    HW = H * W

    in_dtype = jnp.dtype(x_nchw.dtype)
    out_dtype = in_dtype if out_dtype is None else jnp.dtype(out_dtype)

    # Weights are tiny: casting them once per call is negligible next to x/out.
    w_all = params["w_all"].astype(in_dtype)    # (3Cin, Cin)
    wf = params["wf"].astype(in_dtype)          # (Cout, 3Cin)
    b_all = params["b_all"].astype(jnp.float32)  # (3Cin, 1)
    alpha = params["alpha"].astype(jnp.float32)  # (3Cin, 1)
    bf = params["bf"].astype(jnp.float32)        # (Cout, 1)

    x_b = in_dtype.itemsize
    o_b = out_dtype.itemsize

    # ---- generation-aware VMEM budget & tile selection ---------------------
    budget = _vmem_budget_bytes()
    # weights/bias/alpha bytes (count 2x to stay safe if the fallback
    # double-buffers them)
    w_bytes = (C3 * Cin + Cout * C3) * x_b + (2 * C3 + Cout) * 4
    # live VMEM per spatial lane of one tile:
    #   2x double-buffered x tile, 2x double-buffered out tile, f32 h,
    #   h cast for the 2nd matmul (non-f32 path), f32 y before the store cast.
    per_lane = (2 * Cin * x_b
                + 2 * Cout * o_b
                + C3 * 4
                + (C3 * x_b if x_b != 4 else 0)
                + Cout * 4)
    headroom = 2 << 20

    if HW <= 128:
        tile = HW                                   # single full-extent block
    else:
        tile = (budget - 2 * w_bytes - headroom) // per_lane
        tile = max(128, (tile // 128) * 128)        # lane-aligned
        tile = min(tile, 32768)                     # per-step latency cap
        tile = min(tile, (HW // 128) * 128)         # block never exceeds array
        if tile_hw is not None:
            tile = max(128, min((int(tile_hw) // 128) * 128, tile))
        if N == 1:
            # keep >=2 spatial grid steps so both v7x TensorCores get work
            half = _round_up(-(-HW // 2), 128)
            tile = max(128, min(tile, half))

    grid = (N, -(-HW // tile))                      # cdiv; ragged block masked

    # NCHW -> (N, Cin, H*W) is a free view: no pad, no transpose, no astype.
    x3 = x_nchw.reshape(N, Cin, HW)

    def call(weight_pipeline_mode):
        wkw = ({} if weight_pipeline_mode is None
               else {"pipeline_mode": weight_pipeline_mode})

        def const_spec(shape):
            return pl.BlockSpec(shape, lambda n, t: (0,) * len(shape), **wkw)

        return pl.pallas_call(
            _dilation_kernel,
            out_shape=jax.ShapeDtypeStruct((N, Cout, HW), out_dtype),
            grid_spec=pltpu.PrefetchScalarGridSpec(
                num_scalar_prefetch=0,
                grid=grid,
                in_specs=[
                    pl.BlockSpec((1, Cin, tile), lambda n, t: (n, 0, t)),  # x
                    const_spec((C3, Cin)),     # fused branch weights
                    const_spec((C3, 1)),       # fused branch biases
                    const_spec((C3, 1)),       # PReLU slopes
                    const_spec((Cout, C3)),    # final weight
                    const_spec((Cout, 1)),     # final bias
                ],
                out_specs=pl.BlockSpec((1, Cout, tile), lambda n, t: (n, 0, t)),
            ),
            compiler_params=pltpu.CompilerParams(
                dimension_semantics=("parallel", "parallel"),
                vmem_limit_bytes=int(budget),
            ),
        )(x3, w_all, b_all, alpha, wf, bf)

    try:
        # Constant-index weight blocks only need a single VMEM buffer.
        out = call(pl.Buffered(1))
    except Exception:
        out = call(None)   # fall back to default double-buffering

    return out.reshape(N, Cout, H, W)


# ----------------------- parameter init + BN folding ---------------------- #
def _fold_conv_bn(w_oi, conv_bias, gamma, beta, mean, var, eps=1e-5):
    """Fold eval-mode BatchNorm into a 1x1 conv.  Returns (Cout, Cin), (Cout, 1)."""
    scale = gamma / jnp.sqrt(var + eps)            # (Cout,)
    shift = beta - mean * scale
    w_folded = w_oi * scale[:, None]               # scale output channels
    b = shift if conv_bias is None else conv_bias * scale + shift
    return w_folded, b[:, None]


def make_params(key, in_channels, out_channels):
    ks = jax.random.split(key, 9)
    Cin, Cout = in_channels, out_channels

    def bn_stats(k, c):
        k1, k2, k3, k4 = jax.random.split(k, 4)
        gamma = 1.0 + 0.1 * jax.random.normal(k1, (c,), jnp.float32)
        beta = 0.1 * jax.random.normal(k2, (c,), jnp.float32)
        mean = 0.1 * jax.random.normal(k3, (c,), jnp.float32)
        var = jax.random.uniform(k4, (c,), jnp.float32, 0.5, 1.5)
        return gamma, beta, mean, var

    # nn.PReLU default: one scalar slope (0.25) per layer, replicated per
    # channel row so the kernel applies it as a plain vreg op.
    alphas = jnp.full((3,), 0.25, jnp.float32)

    w_rows, b_rows, a_rows = [], [], []
    for idx in range(3):  # layer1/2/3: Conv2d(Cin, Cin, 1, bias=False)+BN+PReLU
        w = 0.3 * jax.random.normal(ks[idx], (Cin, Cin), jnp.float32)
        g, b, m, v = bn_stats(ks[3 + idx], Cin)
        wf_, bf_ = _fold_conv_bn(w, None, g, b, m, v)
        w_rows.append(wf_)
        b_rows.append(bf_)
        a_rows.append(jnp.full((Cin, 1), alphas[idx], jnp.float32))

    params = {
        "w_all": jnp.concatenate(w_rows, axis=0),   # (3Cin, Cin)
        "b_all": jnp.concatenate(b_rows, axis=0),   # (3Cin, 1)
        "alpha": jnp.concatenate(a_rows, axis=0),   # (3Cin, 1)
    }

    # final: Conv2d(3*Cin, Cout, 1, bias=True) + BN(Cout)
    wfin = 0.3 * jax.random.normal(ks[6], (Cout, 3 * Cin), jnp.float32)
    bf_conv = 0.1 * jax.random.normal(ks[7], (Cout,), jnp.float32)
    g, b, m, v = bn_stats(ks[8], Cout)
    wf_f, bf_f = _fold_conv_bn(wfin, bf_conv, g, b, m, v)
    params["wf"] = wf_f       # (Cout, 3Cin)
    params["bf"] = bf_f       # (Cout, 1)
    return params


# ------------------------------ reference --------------------------------- #
def dilation_reference(x_nchw, p):
    N, Cin, H, W = x_nchw.shape
    x = x_nchw.astype(jnp.float32).reshape(N, Cin, H * W)
    h = jnp.einsum("oc,ncp->nop", p["w_all"], x) + p["b_all"][None]
    h = jnp.where(h > 0, h, p["alpha"][None] * h)
    y = jnp.einsum("oc,ncp->nop", p["wf"], h) + p["bf"][None]
    Cout = p["bf"].shape[0]
    return y.reshape(N, Cout, H, W)


if __name__ == "__main__":
    key = jax.random.PRNGKey(0)
    k_x, k_p, k_x2 = jax.random.split(key, 3)

    N, Cin, H, W = 2, 4, 16, 16
    Cout = 8
    x = jax.random.normal(k_x, (N, Cin, H, W), jnp.float32)
    params = make_params(k_p, Cin, Cout)
    y_ref = dilation_reference(x, params)

    # f32 path (exactness check against the reference)
    y32 = jax.block_until_ready(dilation_forward(x, params))
    assert y32.shape == (N, Cout, H, W) and y32.dtype == jnp.float32
    assert jnp.allclose(y32, y_ref, atol=1e-4, rtol=1e-4)

    # Ragged spatial extent (HW not a multiple of the tile) with N == 1:
    # no wrapper pad/slice — Pallas masks the boundary block; also exercises
    # the >=2-spatial-steps split for v7x.
    x_r = jax.random.normal(k_x2, (1, Cin, 20, 20), jnp.float32)
    y_r = jax.block_until_ready(dilation_forward(x_r, params))
    assert y_r.shape == (1, Cout, 20, 20)
    assert jnp.allclose(y_r, dilation_reference(x_r, params), atol=1e-4, rtol=1e-4)

    # bf16 end-to-end path: caller hands in bf16 activations, bf16 output
    # (halves both big HBM streams); bias/PReLU math stays f32 in-kernel.
    y16 = jax.block_until_ready(
        dilation_forward(x.astype(jnp.bfloat16), params, out_dtype=jnp.bfloat16))
    assert y16.shape == (N, Cout, H, W) and y16.dtype == jnp.bfloat16
    assert jnp.allclose(y16.astype(jnp.float32), y_ref, atol=1.5e-1, rtol=7.5e-2)

    print("KERNEL_OK")
</pallas_src>

<mosaic_0001>
module attributes {stable_mosaic.version = 11 : i64} {
  func.func @_dilation_kernel(%arg0: i32, %arg1: i32, %arg2: memref<1x4x256xf32, #tpu.memory_space<vmem>>, %arg3: memref<12x4xf32, #tpu.memory_space<vmem>>, %arg4: memref<12x1xf32, #tpu.memory_space<vmem>>, %arg5: memref<12x1xf32, #tpu.memory_space<vmem>>, %arg6: memref<8x12xf32, #tpu.memory_space<vmem>>, %arg7: memref<8x1xf32, #tpu.memory_space<vmem>>, %arg8: memref<1x8x256xf32, #tpu.memory_space<vmem>>) attributes {dimension_semantics = [#tpu.dimension_semantics<parallel>, #tpu.dimension_semantics<parallel>], iteration_bounds = array<i64: 2, 1>, scalar_prefetch = 0 : i64, scratch_operands = 0 : i64, tpu.core_type = #tpu.core_type<tc>, window_params = [{transform_indices = @transform_0, window_bounds = array<i64: 1, 4, 256>}, {pipeline_mode = #tpu.pipeline_mode<synchronous>, transform_indices = @transform_1, window_bounds = array<i64: 12, 4>}, {pipeline_mode = #tpu.pipeline_mode<synchronous>, transform_indices = @transform_2, window_bounds = array<i64: 12, 1>}, {pipeline_mode = #tpu.pipeline_mode<synchronous>, transform_indices = @transform_3, window_bounds = array<i64: 12, 1>}, {pipeline_mode = #tpu.pipeline_mode<synchronous>, transform_indices = @transform_4, window_bounds = array<i64: 8, 12>}, {pipeline_mode = #tpu.pipeline_mode<synchronous>, transform_indices = @transform_5, window_bounds = array<i64: 8, 1>}, {transform_indices = @transform_6, window_bounds = array<i64: 1, 8, 256>}]} {
    %c0 = arith.constant 0 : index
    %c0_0 = arith.constant 0 : index
    %c0_1 = arith.constant 0 : index
    %0 = vector.load %arg2[%c0, %c0_0, %c0_1] : memref<1x4x256xf32, #tpu.memory_space<vmem>>, vector<1x4x256xf32>
    %1 = vector.shape_cast %0 : vector<1x4x256xf32> to vector<4x256xf32>
    %c0_2 = arith.constant 0 : index
    %c0_3 = arith.constant 0 : index
    %2 = vector.load %arg3[%c0_2, %c0_3] : memref<12x4xf32, #tpu.memory_space<vmem>>, vector<12x4xf32>
    %cst = arith.constant dense<0.000000e+00> : vector<12x256xf32>
    %3 = tpu.matmul %2, %1, %cst {dimension_numbers = #tpu.dot_dimension_numbers<[1], [0], [0], [1], [0, 0, 1, 1], [], []>} : vector<12x4xf32>, vector<4x256xf32>, vector<12x256xf32> -> vector<12x256xf32>
    %c0_4 = arith.constant 0 : index
    %c0_5 = arith.constant 0 : index
    %4 = vector.load %arg4[%c0_4, %c0_5] : memref<12x1xf32, #tpu.memory_space<vmem>>, vector<12x1xf32>
    %5 = vector.broadcast %4 : vector<12x1xf32> to vector<12x256xf32>
    %6 = arith.addf %3, %5 : vector<12x256xf32>
    %cst_6 = arith.constant 0.000000e+00 : f32
    %7 = vector.broadcast %cst_6 : f32 to vector<12x256xf32>
    %8 = arith.cmpf ogt, %6, %7 : vector<12x256xf32>
    %c0_7 = arith.constant 0 : index
    %c0_8 = arith.constant 0 : index
    %9 = vector.load %arg5[%c0_7, %c0_8] : memref<12x1xf32, #tpu.memory_space<vmem>>, vector<12x1xf32>
    %10 = vector.broadcast %9 : vector<12x1xf32> to vector<12x256xf32>
    %11 = arith.mulf %10, %6 : vector<12x256xf32>
    %12 = arith.select %8, %6, %11 : vector<12x256xi1>, vector<12x256xf32>
    %c0_9 = arith.constant 0 : index
    %c0_10 = arith.constant 0 : index
    %13 = vector.load %arg6[%c0_9, %c0_10] : memref<8x12xf32, #tpu.memory_space<vmem>>, vector<8x12xf32>
    %cst_11 = arith.constant dense<0.000000e+00> : vector<8x256xf32>
    %14 = tpu.matmul %13, %12, %cst_11 {dimension_numbers = #tpu.dot_dimension_numbers<[1], [0], [0], [1], [0, 0, 1, 1], [], []>} : vector<8x12xf32>, vector<12x256xf32>, vector<8x256xf32> -> vector<8x256xf32>
    %c0_12 = arith.constant 0 : index
    %c0_13 = arith.constant 0 : index
    %15 = vector.load %arg7[%c0_12, %c0_13] : memref<8x1xf32, #tpu.memory_space<vmem>>, vector<8x1xf32>
    %16 = vector.broadcast %15 : vector<8x1xf32> to vector<8x256xf32>
    %17 = arith.addf %14, %16 : vector<8x256xf32>
    %c0_14 = arith.constant 0 : index
    %c0_15 = arith.constant 0 : index
    %c0_16 = arith.constant 0 : index
    %18 = vector.load %arg8[%c0_14, %c0_15, %c0_16] : memref<1x8x256xf32, #tpu.memory_space<vmem>>, vector<1x8x256xf32>
    %19 = vector.shape_cast %18 : vector<1x8x256xf32> to vector<8x256xf32>
    %20 = vector.shape_cast %17 : vector<8x256xf32> to vector<1x8x256xf32>
    tpu.vector_store %arg8[%c0_14, %c0_15, %c0_16], %20 {strides = array<i32>} : memref<1x8x256xf32, #tpu.memory_space<vmem>>, vector<1x8x256xf32>,
    return
  }
  func.func @transform_0(%arg0: i32, %arg1: i32) -> (i32, i32, i32) {
    %c0_i32 = arith.constant 0 : i32
    %c0_i32_0 = arith.constant 0 : i32
    return %arg0, %c0_i32, %arg1 : i32, i32, i32
  }
  func.func @transform_1(%arg0: i32, %arg1: i32) -> (i32, i32) {
    %c0_i32 = arith.constant 0 : i32
    %c0_i32_0 = arith.constant 0 : i32
    %c0_i32_1 = arith.constant 0 : i32
    return %c0_i32, %c0_i32_0 : i32, i32
  }
  func.func @transform_2(%arg0: i32, %arg1: i32) -> (i32, i32) {
    %c0_i32 = arith.constant 0 : i32
    %c0_i32_0 = arith.constant 0 : i32
    %c0_i32_1 = arith.constant 0 : i32
    return %c0_i32, %c0_i32_0 : i32, i32
  }
  func.func @transform_3(%arg0: i32, %arg1: i32) -> (i32, i32) {
    %c0_i32 = arith.constant 0 : i32
    %c0_i32_0 = arith.constant 0 : i32
    %c0_i32_1 = arith.constant 0 : i32
    return %c0_i32, %c0_i32_0 : i32, i32
  }
  func.func @transform_4(%arg0: i32, %arg1: i32) -> (i32, i32) {
    %c0_i32 = arith.constant 0 : i32
    %c0_i32_0 = arith.constant 0 : i32
    %c0_i32_1 = arith.constant 0 : i32
    return %c0_i32, %c0_i32_0 : i32, i32
  }
  func.func @transform_5(%arg0: i32, %arg1: i32) -> (i32, i32) {
    %c0_i32 = arith.constant 0 : i32
    %c0_i32_0 = arith.constant 0 : i32
    %c0_i32_1 = arith.constant 0 : i32
    return %c0_i32, %c0_i32_0 : i32, i32
  }
  func.func @transform_6(%arg0: i32, %arg1: i32) -> (i32, i32, i32) {
    %c0_i32 = arith.constant 0 : i32
    %c0_i32_0 = arith.constant 0 : i32
    return %arg0, %c0_i32, %arg1 : i32, i32, i32
  }
}

module attributes {stable_mosaic.version = 11 : i64} {
  func.func @_dilation_kernel(%arg0: i32, %arg1: i32, %arg2: memref<1x4x256xf32, #tpu.memory_space<vmem>>, %arg3: memref<12x4xf32, #tpu.memory_space<vmem>>, %arg4: memref<12x1xf32, #tpu.memory_space<vmem>>, %arg5: memref<12x1xf32, #tpu.memory_space<vmem>>, %arg6: memref<8x12xf32, #tpu.memory_space<vmem>>, %arg7: memref<8x1xf32, #tpu.memory_space<vmem>>, %arg8: memref<1x8x256xf32, #tpu.memory_space<vmem>>) attributes {dimension_semantics = [#tpu.dimension_semantics<parallel>, #tpu.dimension_semantics<parallel>], iteration_bounds = array<i64: 2, 1>, scalar_prefetch = 0 : i64, scratch_operands = 0 : i64, tpu.core_type = #tpu.core_type<tc>, window_params = [{transform_indices = @transform_0, window_bounds = array<i64: 1, 4, 256>}, {pipeline_mode = #tpu.pipeline_mode<synchronous>, transform_indices = @transform_1, window_bounds = array<i64: 12, 4>}, {pipeline_mode = #tpu.pipeline_mode<synchronous>, transform_indices = @transform_2, window_bounds = array<i64: 12, 1>}, {pipeline_mode = #tpu.pipeline_mode<synchronous>, transform_indices = @transform_3, window_bounds = array<i64: 12, 1>}, {pipeline_mode = #tpu.pipeline_mode<synchronous>, transform_indices = @transform_4, window_bounds = array<i64: 8, 12>}, {pipeline_mode = #tpu.pipeline_mode<synchronous>, transform_indices = @transform_5, window_bounds = array<i64: 8, 1>}, {transform_indices = @transform_6, window_bounds = array<i64: 1, 8, 256>}]} {
    %c0 = arith.constant 0 : index
    %c0_0 = arith.constant 0 : index
    %c0_1 = arith.constant 0 : index
    %0 = vector.load %arg2[%c0, %c0_0, %c0_1] : memref<1x4x256xf32, #tpu.memory_space<vmem>>, vector<1x4x256xf32>
    %1 = vector.shape_cast %0 : vector<1x4x256xf32> to vector<4x256xf32>
    %c0_2 = arith.constant 0 : index
    %c0_3 = arith.constant 0 : index
    %2 = vector.load %arg3[%c0_2, %c0_3] : memref<12x4xf32, #tpu.memory_space<vmem>>, vector<12x4xf32>
    %cst = arith.constant dense<0.000000e+00> : vector<12x256xf32>
    %3 = tpu.matmul %2, %1, %cst {dimension_numbers = #tpu.dot_dimension_numbers<[1], [0], [0], [1], [0, 0, 1, 1], [], []>} : vector<12x4xf32>, vector<4x256xf32>, vector<12x256xf32> -> vector<12x256xf32>
    %c0_4 = arith.constant 0 : index
    %c0_5 = arith.constant 0 : index
    %4 = vector.load %arg4[%c0_4, %c0_5] : memref<12x1xf32, #tpu.memory_space<vmem>>, vector<12x1xf32>
    %5 = vector.broadcast %4 : vector<12x1xf32> to vector<12x256xf32>
    %6 = arith.addf %3, %5 : vector<12x256xf32>
    %cst_6 = arith.constant 0.000000e+00 : f32
    %7 = vector.broadcast %cst_6 : f32 to vector<12x256xf32>
    %8 = arith.cmpf ogt, %6, %7 : vector<12x256xf32>
    %c0_7 = arith.constant 0 : index
    %c0_8 = arith.constant 0 : index
    %9 = vector.load %arg5[%c0_7, %c0_8] : memref<12x1xf32, #tpu.memory_space<vmem>>, vector<12x1xf32>
    %10 = vector.broadcast %9 : vector<12x1xf32> to vector<12x256xf32>
    %11 = arith.mulf %10, %6 : vector<12x256xf32>
    %12 = arith.select %8, %6, %11 : vector<12x256xi1>, vector<12x256xf32>
    %c0_9 = arith.constant 0 : index
    %c0_10 = arith.constant 0 : index
    %13 = vector.load %arg6[%c0_9, %c0_10] : memref<8x12xf32, #tpu.memory_space<vmem>>, vector<8x12xf32>
    %cst_11 = arith.constant dense<0.000000e+00> : vector<8x256xf32>
    %14 = tpu.matmul %13, %12, %cst_11 {dimension_numbers = #tpu.dot_dimension_numbers<[1], [0], [0], [1], [0, 0, 1, 1], [], []>} : vector<8x12xf32>, vector<12x256xf32>, vector<8x256xf32> -> vector<8x256xf32>
    %c0_12 = arith.constant 0 : index
    %c0_13 = arith.constant 0 : index
    %15 = vector.load %arg7[%c0_12, %c0_13] : memref<8x1xf32, #tpu.memory_space<vmem>>, vector<8x1xf32>
    %16 = vector.broadcast %15 : vector<8x1xf32> to vector<8x256xf32>
    %17 = arith.addf %14, %16 : vector<8x256xf32>
    %c0_14 = arith.constant 0 : index
    %c0_15 = arith.constant 0 : index
    %c0_16 = arith.constant 0 : index
    %18 = vector.load %arg8[%c0_14, %c0_15, %c0_16] : memref<1x8x256xf32, #tpu.memory_space<vmem>>, vector<1x8x256xf32>
    %19 = vector.shape_cast %18 : vector<1x8x256xf32> to vector<8x256xf32>
    %20 = vector.shape_cast %17 : vector<8x256xf32> to vector<1x8x256xf32>
    tpu.vector_store %arg8[%c0_14, %c0_15, %c0_16], %20 {strides = array<i32>} : memref<1x8x256xf32, #tpu.memory_space<vmem>>, vector<1x8x256xf32>,
    return
  }
  func.func @transform_0(%arg0: i32, %arg1: i32) -> (i32, i32, i32) {
    %c0_i32 = arith.constant 0 : i32
    %c0_i32_0 = arith.constant 0 : i32
    return %arg0, %c0_i32, %arg1 : i32, i32, i32
  }
  func.func @transform_1(%arg0: i32, %arg1: i32) -> (i32, i32) {
    %c0_i32 = arith.constant 0 : i32
    %c0_i32_0 = arith.constant 0 : i32
    %c0_i32_1 = arith.constant 0 : i32
    return %c0_i32, %c0_i32_0 : i32, i32
  }
  func.func @transform_2(%arg0: i32, %arg1: i32) -> (i32, i32) {
    %c0_i32 = arith.constant 0 : i32
    %c0_i32_0 = arith.constant 0 : i32
    %c0_i32_1 = arith.constant 0 : i32
    return %c0_i32, %c0_i32_0 : i32, i32
  }
  func.func @transform_3(%arg0: i32, %arg1: i32) -> (i32, i32) {
    %c0_i32 = arith.constant 0 : i32
    %c0_i32_0 = arith.constant 0 : i32
    %c0_i32_1 = arith.constant 0 : i32
    return %c0_i32, %c0_i32_0 : i32, i32
  }
  func.func @transform_4(%arg0: i32, %arg1: i32) -> (i32, i32) {
    %c0_i32 = arith.constant 0 : i32
    %c0_i32_0 = arith.constant 0 : i32
    %c0_i32_1 = arith.constant 0 : i32
    return %c0_i32, %c0_i32_0 : i32, i32
  }
  func.func @transform_5(%arg0: i32, %arg1: i32) -> (i32, i32) {
    %c0_i32 = arith.constant 0 : i32
    %c0_i32_0 = arith.constant 0 : i32
    %c0_i32_1 = arith.constant 0 : i32
    return %c0_i32, %c0_i32_0 : i32, i32
  }
  func.func @transform_6(%arg0: i32, %arg1: i32) -> (i32, i32, i32) {
    %c0_i32 = arith.constant 0 : i32
    %c0_i32_0 = arith.constant 0 : i32
    return %arg0, %c0_i32, %arg1 : i32, i32, i32
  }
}

</mosaic_0001>

<bundles_post_ra>
// kernel: tpu_custom_call.1
= control target key start
LH: loop header
LB: loop body
LE: loop exit
PB: predicated region body
PF: predicated region fallthrough
CT: control target
= control target key end

     0   :  { %s1530_s0 = inlined_call_operand.hbm [shape: f32[2,4,256], index: 0, kind: input, shape index: {}]   ;;  %s1531_s1 = inlined_call_operand.hbm [shape: f32[12,4], index: 1, kind: input, shape index: {}]   ;;  %s1532_s2 = inlined_call_operand.hbm [shape: f32[12,1], index: 2, kind: input, shape index: {}]   ;;  %s1533_s3 = inlined_call_operand.hbm [shape: f32[12,1], index: 3, kind: input, shape index: {}]   ;;  %s1534_s4 = inlined_call_operand.hbm [shape: f32[8,12], index: 4, kind: input, shape index: {}]   ;;  %s1535_s5 = inlined_call_operand.hbm [shape: f32[8,1], index: 5, kind: input, shape index: {}]   ;;  %s1536_s6 = inlined_call_operand.hbm [shape: f32[2,8,256], index: 6, kind: output, shape index: {}]  }
   0x1   :  { %1542 = sst [smem:[#allocation19_spill]] %s1531_s1 }
   0x2   :  { %11 = vsyncpa [#allocation3], 0 }
   0x3   :  { %13 = vsyncpa [#allocation3 + $0x1], 0 }
   0x4   :  { %14 = vsyncpa [#allocation6], 0 }
   0x5   :  { %15 = vsyncpa [#allocation9], 0 }
   0x6   :  { %16 = vsyncpa [#allocation12], 0 }
   0x7   :  { %17 = vsyncpa [#allocation4], 0 }
   0x8   :  { %19 = vsyncpa [#allocation4 + $0x1], 0  ;;  %s1200_s21 = smov 0   ;;  %s1202_s22 = smov 0  }
   0x9   :  { %s1204_s23 = smov 0   ;;  %s1206_s24 = smov 0  }
   0xa   :  { %s1208_s25 = smov 0   ;;  %s1210_s26 = smov 0  }
   0xb LB: > { %s1537_s27 = sadd.s32 4294967295, %s1151_s26   ;;  %p728_p0 = scmp.ge.s32.totalorder %s1151_s26, 1  ;;  %s1151_s26 = sphi %s1210_s26, %s25_s26   ;;  %s1147_s25 = sphi %s1208_s25, %s1564_s25   ;;  %s1143_s24 = sphi %s1206_s24, %s1563_s24   ;;  %s1139_s23 = sphi %s1204_s23, %s1562_s23   ;;  %s1135_s22 = sphi %s1202_s22, %s1561_s22   ;;  %s1131_s21 = sphi %s1200_s21, %s1560_s21  }
   0xc   : > { %p1234_p1 = scmp.eq.s32.totalorder %s1537_s27, 0  ;;  %p203_p2 = scmp.lt.s32.totalorder %s1151_s26, 3 }
   0xd   : > { %s1153_s30 = smov [#allocation5]   ;;  %s1154_s9 = smov [#allocation8]  }
   0xe   : > { %s1543_s28 = scalar_select %p1234_p1, 1, 0 }
   0xf   : > { %p1239_p3 = pnand %p728_p0, %p203_p2  ;;  %s215_s7 = sshll.u32 %s1153_s30, 4  ;;  %s1243_s7 = int_to_ptr.vmem [resolvable:$true] %s215_s7 }
  0x10   : > { %s241_s10 = sshll.u32 %s1154_s9, 4  ;;  %s1155_s11 = smov [#allocation7]   ;;  %s1254_s10 = int_to_ptr.vmem [resolvable:$true] %s241_s10 }
  0x11   : > { %s1544_s29 = scalar_select %p1239_p3, 1, 0 }
  0x12   : > { %p790_p4 = pneg %p1239_p3  ;;  %s1256_s12 = sshll.u32 %s1155_s11, 4  ;;  %s229_s12 = int_to_ptr.vmem [resolvable:$true] %s1256_s12 }
  0x13   : > { %s1546_s1 = sld [smem:[#allocation19_spill]] }
  0x14   : > { %p1250_p6 = pnand %p790_p4, %p1234_p1 }
  0x16   : > { %p1266_p8 = pneg %p1250_p6 }
  0x19   : > { %s887_s15 = scalar_lea.hbm %s1546_s1, 256 }
  0x1a   : > { %p888_p7 = scmp.ne.s32.totalorder %s1546_s1, %s887_s15  ;;  %p894_p11 = scmp.lt.u32.totalorder %s887_s15, %s1546_s1 }
  0x1c   : > { %p890_p9 = pnand %p1266_p8, %p888_p7 }
  0x1e   : > { %p891_p10 = pneg %p890_p9 }
  0x20   : > { %p896_p12 = pnand %p894_p11, %p891_p10 }
  0x22   : > { %899 = shalt.err (!%p896_p12)
}
  0x23   : > { %s900_s30 = scalar_lea.vmem %s1243_s7, 256  ;;  %p908_p4 = scmp.lt.s32.totalorder %s1243_s7, %s1243_s7 }
  0x24   : > { %p901_p13 = scmp.ne.s32.totalorder %s1243_s7, %s900_s30  ;;  %p909_p5 = scmp.lt.s32.totalorder %s900_s30, %s900_s30 }
  0x26   : > { %p903_p0 = pnand %p901_p13, %p1266_p8  ;;  %p910_p7 = por %p909_p5, %p908_p4 }
  0x28   : > { %p904_p2 = pneg %p903_p0 }
  0x2a   : > { %p911_p9 = pnand %p910_p7, %p904_p2 }
  0x2c   : > { %914 = shalt.err (!%p911_p9)
}
  0x2d   : > { %s1156_s9 = smov 128   ;;  %s1157_s11 = smov 8  }
  0x2e   : > { %793 = dma.hbm_to_vmem [thread:$0]  (!%p1250_p6), %s1546_s1, 256, %s1243_s7, [#allocation6], %s1156_s9, %s1156_s9, %s1157_s11  }
  0x2f   : > { %s915_s17 = scalar_lea.hbm %s1533_s3, 256 }
  0x30   : > { %p916_p5 = scmp.ne.s32.totalorder %s1533_s3, %s915_s17  ;;  %p922_p12 = scmp.lt.u32.totalorder %s915_s17, %s1533_s3 }
  0x32   : > { %p918_p10 = pnand %p916_p5, %p1266_p8 }
  0x34   : > { %p919_p11 = pneg %p918_p10 }
  0x36   : > { %p924_p13 = pnand %p922_p12, %p919_p11 }
  0x38   : > { %927 = shalt.err (!%p924_p13)
}
  0x39   : > { %s928_s7 = scalar_lea.vmem %s1254_s10, 256  ;;  %p936_p7 = scmp.lt.s32.totalorder %s1254_s10, %s1254_s10 }
  0x3a   : > { %p929_p0 = scmp.ne.s32.totalorder %s1254_s10, %s928_s7  ;;  %p937_p9 = scmp.lt.s32.totalorder %s928_s7, %s928_s7 }
  0x3c   : > { %p931_p2 = pnand %p929_p0, %p1266_p8  ;;  %p938_p5 = por %p937_p9, %p936_p7 }
  0x3e   : > { %p932_p4 = pneg %p931_p2 }
  0x40   : > { %p939_p10 = pnand %p938_p5, %p932_p4 }
  0x42   : > { %942 = shalt.err (!%p939_p10)
}
  0x43   : > { %799 = dma.hbm_to_vmem [thread:$0]  (!%p1250_p6), %s1533_s3, 256, %s1254_s10, [#allocation9], %s1156_s9, %s1156_s9, %s1157_s11  }
  0x44   : > { %s943_s16 = scalar_lea.hbm %s1532_s2, 256 }
  0x45   : > { %p944_p11 = scmp.ne.s32.totalorder %s1532_s2, %s943_s16  ;;  %p950_p0 = scmp.lt.u32.totalorder %s943_s16, %s1532_s2 }
  0x47   : > { %p946_p12 = pnand %p944_p11, %p1266_p8 }
  0x49   : > { %p947_p13 = pneg %p946_p12 }
  0x4b   : > { %p952_p2 = pnand %p950_p0, %p947_p13 }
  0x4d   : > { %955 = shalt.err (!%p952_p2)
}
  0x4e   : > { %s956_s7 = scalar_lea.vmem %s229_s12, 256  ;;  %p964_p5 = scmp.lt.s32.totalorder %s229_s12, %s229_s12 }
  0x4f   : > { %p957_p4 = scmp.ne.s32.totalorder %s229_s12, %s956_s7  ;;  %p965_p10 = scmp.lt.s32.totalorder %s956_s7, %s956_s7 }
  0x51   : > { %p959_p7 = pnand %p957_p4, %p1266_p8  ;;  %p966_p3 = por %p965_p10, %p964_p5 }
  0x53   : > { %p960_p9 = pneg %p959_p7 }
  0x55   : > { %p967_p1 = pnand %p966_p3, %p960_p9 }
  0x57   : > { %970 = shalt.err (!%p967_p1)
}
  0x58   : > { %796 = dma.hbm_to_vmem [thread:$0]  (!%p1250_p6), %s1532_s2, 256, %s229_s12, [#allocation6], %s1156_s9, %s1156_s9, %s1157_s11  }
  0x59   : > { %s1158_s13 = smov [#allocation10]   ;;  %s1159_s15 = smov [#allocation11]  }
  0x5a   : > { %s255_s14 = sshll.u32 %s1158_s13, 4  ;;  %s266_s16 = sshll.u32 %s1159_s15, 4  ;;  %s256_s14 = int_to_ptr.vmem [resolvable:$true] %s255_s14  ;;  %s267_s16 = int_to_ptr.vmem [resolvable:$true] %s266_s16 }
  0x5b   : > { %s971_s20 = scalar_lea.hbm %s1534_s4, 128 }
  0x5c   : > { %p972_p1 = scmp.ne.s32.totalorder %s1534_s4, %s971_s20  ;;  %p978_p12 = scmp.lt.u32.totalorder %s971_s20, %s1534_s4 }
  0x5e   : > { %p974_p3 = pnand %p972_p1, %p1266_p8 }
  0x60   : > { %p975_p11 = pneg %p974_p3 }
  0x62   : > { %p980_p13 = pnand %p978_p12, %p975_p11 }
  0x64   : > { %983 = shalt.err (!%p980_p13)
}
  0x65   : > { %s984_s12 = scalar_lea.vmem %s256_s14, 128  ;;  %p992_p7 = scmp.lt.s32.totalorder %s256_s14, %s256_s14 }
  0x66   : > { %p985_p0 = scmp.ne.s32.totalorder %s256_s14, %s984_s12  ;;  %p993_p9 = scmp.lt.s32.totalorder %s984_s12, %s984_s12 }
  0x68   : > { %p987_p2 = pnand %p985_p0, %p1266_p8  ;;  %p994_p5 = por %p993_p9, %p992_p7 }
  0x6a   : > { %p988_p4 = pneg %p987_p2 }
  0x6c   : > { %p995_p10 = pnand %p994_p5, %p988_p4 }
  0x6e   : > { %998 = shalt.err (!%p995_p10)
}
  0x6f   : > { %802 = dma.hbm_to_vmem [thread:$0]  (!%p1250_p6), %s1534_s4, 128, %s256_s14, [#allocation9]  }
  0x70   : > { %s999_s13 = scalar_lea.hbm %s1535_s5, 128 }
  0x71   : > { %p1000_p1 = scmp.ne.s32.totalorder %s1535_s5, %s999_s13  ;;  %p1006_p12 = scmp.lt.u32.totalorder %s999_s13, %s1535_s5 }
  0x73   : > { %p1002_p3 = pnand %p1000_p1, %p1266_p8 }
  0x75   : > { %p1003_p11 = pneg %p1002_p3 }
  0x77   : > { %p1008_p13 = pnand %p1006_p12, %p1003_p11 }
  0x79   : > { %1011 = shalt.err (!%p1008_p13)
}
  0x7a   : > { %s1012_s30 = scalar_lea.vmem %s267_s16, 128  ;;  %p1020_p7 = scmp.lt.s32.totalorder %s267_s16, %s267_s16 }
  0x7b   : > { %p1013_p0 = scmp.ne.s32.totalorder %s267_s16, %s1012_s30  ;;  %p1021_p9 = scmp.lt.s32.totalorder %s1012_s30, %s1012_s30 }
  0x7d   : > { %p1015_p2 = pnand %p1013_p0, %p1266_p8  ;;  %p1022_p5 = por %p1021_p9, %p1020_p7 }
  0x7f   : > { %p1016_p4 = pneg %p1015_p2 }
  0x81   : > { %p1023_p10 = pnand %p1022_p5, %p1016_p4 }
  0x83   : > { %1026 = shalt.err (!%p1023_p10)
}
  0x84   : > { %805 = dma.hbm_to_vmem [thread:$0]  (!%p1250_p6), %s1535_s5, 128, %s267_s16, [#allocation12]  }
  0x85   : > { %s727_s18 = sadd.s32 4294967294, %s1151_s26   ;;  %s37_s10 = sadd.s32 1, %s1147_s25 }
  0x86   : > { %s46_s8 = sadd.s32 1, %s1139_s23  ;;  %p39_p8 = scmp.ge.s32.totalorder %s37_s10, 2 }
  0x87   : > { %p53_p1 = scmp.ne.s32.totalorder %s1139_s23, %s1135_s22  ;;  %p54_p3 = scmp.eq.s32.totalorder %s1151_s26, 0 }
  0x88   : > { %p59_p11 = scmp.ne.s32.totalorder %s1135_s22, %s1131_s21  ;;  %s1566_s10 = smov (%p39_p8, %s37_s10), 0 }
  0x89   : > { %p1384_p12 = por %p54_p3, %p53_p1  ;;  %p1549_p13 = scmp.ne.s32.totalorder %s1543_s28, 0 }
  0x8a   : > { %s41_s9 = ssub.s32 %s1147_s25, %s1566_s10  ;;  %s1551_s11 = sadd.s32 4294967295, %s1151_s26  }
  0x8b   : > { %p1390_p6 = por %p1549_p13, %p59_p11  ;;  %p190_p0 = scmp.eq.s32.totalorder %s1551_s11, 1 }
  0x8c   : > { %p44_p2 = scmp.eq.s32.totalorder %s41_s9, 0  ;;  %p196_p4 = scmp.eq.s32.totalorder %s727_s18, 1 }
  0x8d   : > { %p1398_p7 = por %p190_p0, %p53_p1  ;;  %p819_p9 = scmp.lt.s32.totalorder %s1151_s26, 2 }
  0x8e   : > { %s1404_s27 = scalar_select %p44_p2, %s1139_s23, %s46_s8  }
  0x8f   : > { %s1552_s1 = scalar_select %p1398_p7, 1, 0 }
  0x90   : > { %p1406_p5 = por %p196_p4, %p59_p11  ;;  %s277_s15 = sand.u32 1, %s1139_s23  }
  0x91   : > { %s735_s17 = sshll.u32 %s277_s15, 3  ;;  %s758_s19 = sshll.u32 %s1147_s25, 7 }
  0x92   : > { %s1553_s13 = scalar_select %p1406_p5, 1, 0 }
  0x93   : > { %s1415_s14 = scalar_lea.hbm %s1530_s0, %s758_s19  ;;  %s281_s7 = scalar_lea.vmem [#allocation2], %s735_s17 }
  0x94   : > { %s291_s18 = sshll.u32 %s281_s7, 4  ;;  %p1421_p10 = pnand %p819_p9, %p1384_p12  ;;  %s1417_s18 = int_to_ptr.vmem [resolvable:$true] %s291_s18 }
  0x95   : > { %s278_s9 = scalar_lea.sflag [#allocation3], %s277_s15  ;;  %s1027_s11 = scalar_lea.hbm %s1415_s14, 128 }
  0x96   : > { %p1028_p8 = scmp.ne.s32.totalorder %s1415_s14, %s1027_s11  ;;  %p1029_p1 = pneg %p1421_p10 }
  0x97   : > { %s1032_s20 = scalar_lea.hbm %s1530_s0, 256  ;;  %p1033_p12 = scmp.lt.u32.totalorder %s1415_s14, %s1530_s0 }
  0x98   : > { %p1030_p3 = pnand %p1029_p1, %p1028_p8  ;;  %p1034_p13 = scmp.lt.u32.totalorder %s1032_s20, %s1027_s11 }
  0x99   : > { %p1036_p2 = scmp.lt.u32.totalorder %s1027_s11, %s1415_s14 }
  0x9a   : > { %p1031_p11 = pneg %p1030_p3  ;;  %p1035_p0 = por %p1034_p13, %p1033_p12 }
  0x9c   : > { %p1037_p4 = por %p1036_p2, %p1035_p0 }
  0x9e   : > { %p1038_p9 = pnand %p1037_p4, %p1031_p11 }
  0xa0   : > { %1041 = shalt.err (!%p1038_p9)
}
  0xa1   : > { %s1042_s15 = scalar_lea.vmem %s1417_s18, 128  ;;  %s1160_s7 = smov [#allocation2]  }
  0xa2   : > { %p1043_p8 = scmp.ne.s32.totalorder %s1417_s18, %s1042_s15  ;;  %s1047_s17 = sshll.u32 %s1160_s7, 4  ;;  %s1048_s17 = int_to_ptr.vmem [resolvable:$false] %s1047_s17 }
  0xa3   : > { %s1049_s19 = scalar_lea.vmem %s1048_s17, 256  ;;  %p1050_p7 = scmp.lt.s32.totalorder %s1417_s18, %s1048_s17 }
  0xa4   : > { %p1045_p3 = pnand %p1043_p8, %p1029_p1  ;;  %p1051_p12 = scmp.lt.s32.totalorder %s1049_s19, %s1042_s15 }
  0xa6   : > { %p1046_p5 = pneg %p1045_p3  ;;  %p1052_p13 = por %p1051_p12, %p1050_p7 }
  0xa8   : > { %p1053_p0 = pnand %p1052_p13, %p1046_p5 }
  0xaa   : > { %1056 = shalt.err (!%p1053_p0)
}
  0xab   : > { %809 = dma.hbm_to_vmem [thread:$0]  (!%p1421_p10), %s1415_s14, 128, %s1417_s18, %s278_s9  }
  0xac   : > { %p1555_p11 = scmp.ne.s32.totalorder %s1544_s29, 0 }
  0xad   : > { %s1453_s11 = sand.u32 (!%p1555_p11), 1, %s1135_s22  }
  0xae   : > { %300 = sbr.rel (%p1555_p11) target bundleno = 652 (0x28c), region = 44  ;;  %s739_s20 = sshll.u32 (!%p1555_p11), %s1453_s11, 3 }
  0xaf   : > { %s303_s12 = scalar_lea.sflag (!%p1555_p11), [#allocation3], %s1453_s11  ;;  %s306_s30 = scalar_lea.vmem (!%p1555_p11), [#allocation2], %s739_s20 }
  0xb5   : > { %1110 = dma.done.wait (%p1390_p6), %s303_s12, 128  }
  0xb6   : > { %1112 = vsyncadd (%p1390_p6), %s303_s12, 4294967168  ;;  %p1556_p7 = scmp.ne.s32.totalorder %s1543_s28, 0 }
  0xb8   : > { %1114 = dma.done.wait (%p1556_p7), [#allocation6], 512  }
  0xb9   : > { %1116 = vsyncadd (%p1556_p7), [#allocation6], 4294966784 }
  0xba   : > { %1118 = dma.done.wait (%p1556_p7), [#allocation9], 384  }
  0xbb   : > { %1120 = vsyncadd (%p1556_p7), [#allocation9], 4294966912 }
  0xbc   : > { %1122 = dma.done.wait (%p1556_p7), [#allocation12], 128  }
  0xbd   : > { %1124 = vsyncadd (%p1556_p7), [#allocation12], 4294967168  ;;  %v1161_v0 = vmov 0.0   ;;  %v1162_v1 = vmov 0   ;;  %v357_v2 = vld [vmem:[%s306_s30] sm:$0xff]  ;;  %vm381_vm0 = vcmask 1043456  }
  0xbe   : > { %450 = vmatprep.mubr.f32.mxu0 %v1161_v0  ;;  %884 = vset.pattern.permute.xlu0 %v1162_v1  ;;  %v373_v3 = vcombine.high %v357_v2, %v357_v2  ;;  %v360_v4 = vld [vmem:[#allocation7] sm:$0xff]  ;;  %v467_v5 = vld [vmem:[#allocation8] sm:$0xff]  ;;  %vm374_vm1 = vcmask 31744   ;;  %v361_v7 = vld [vmem:[#allocation7 + $0x8] sm:$0xf]  ;;  %vm1163_vm6 = vmmov 1  }
  0xbf   : > { %885 = vset.pattern.permute.xlu1 %v1162_v1  ;;  %568 = vmatprep.mubr.f32.mxu1 %v1161_v0  ;;  %v358_v6 = vld [vmem:[#allocation5] sm:$0xff]  ;;  %v468_v8 = vld [vmem:[#allocation8 + $0x8] sm:$0xf]  ;;  %v488_v10 = vld [vmem:[#allocation11] sm:$0xff]  ;;  %vm494_vm8 = vcmask 97280   ;;  %s745_s28 = sshll.u32 %s1453_s11, 4 }
  0xc0   : > { %364 = vperm.xlu0 %884, %v360_v4   ;;  %471 = vperm.xlu1 %885, %v467_v5   ;;  %v359_v9 = vld [vmem:[#allocation5 + $0x8] sm:$0xf]  ;;  %vm761_vm7 = vmpackc.low %vm381_vm0, %vm1163_vm6  ;;  %v487_v33 = vld [vmem:[#allocation10] sm:$0xff]  ;;  %s759_s29 = sshll.u32 %s1143_s24, 8  ;;  %s354_s16 = scalar_lea.vmem [#allocation13], %s745_s28 }
  0xc1   : > { %746 = vmatprep.subr.msk.mxu0 %vm381_vm0, %v373_v3  ;;  %s594_s14 = sshll.u32 %s354_s16, 4  ;;  %s1481_s9 = scalar_lea.hbm %s1536_s6, %s759_s29  ;;  %s1483_s14 = int_to_ptr.vmem [resolvable:$true] %s594_s14 }
  0xc2   : > { %747 = vmatpush1.msk.msra.mxu0 %vm381_vm0, %v357_v2  ;;  %s578_s24 = scalar_lea.sflag [#allocation4], %s1453_s11  ;;  %s1057_s15 = scalar_lea.vmem %s1483_s14, 256 }
  0xc3   : > { %748 = vmatmul.mubr.msk.f32.vlgmr.msra.gmra.mrb[0].mxu0 %vm374_vm1, %v358_v6  ;;  %p1058_p6 = scmp.ne.s32.totalorder %s1483_s14, %s1057_s15  ;;  %p1557_p5 = scmp.ne.s32.totalorder %s1552_s1, 0 }
  0xc4   : > { %456 = vmatprep.mubr.f32.mxu0 %v1161_v0  ;;  %369 = vperm.xlu0 %884, %v361_v7   ;;  %s1164_s7 = smov [#allocation13]  }
  0xc5   : > { %476 = vperm.xlu1 %885, %v468_v8   ;;  %p1059_p10 = pnand %p1058_p6, %p1557_p5  ;;  %s1061_s17 = sshll.u32 %s1164_s7, 4  ;;  %s1062_s17 = int_to_ptr.vmem [resolvable:$false] %s1061_s17 }
  0xc6   : > { %s1063_s19 = scalar_lea.vmem %s1062_s17, 512  ;;  %p1064_p2 = scmp.lt.s32.totalorder %s1483_s14, %s1062_s17 }
  0xc7   : > { %749 = vmatmul.mubr.msk.f32.gmra.mrb[2].mxu0 %vm374_vm1, %v359_v9  ;;  %p1060_p1 = pneg %p1059_p10  ;;  %p1065_p4 = scmp.lt.s32.totalorder %s1063_s19, %s1057_s15 }
  0xc8   : > { %491 = vperm.xlu0 %884, %v488_v10  }
  0xc9   : > { %p1066_p9 = por %p1065_p4, %p1064_p2 }
  0xcb   : > { %p1067_p8 = pnand %p1066_p9, %p1060_p1 }
 0x13f   : > { %v365_v11 = vpop.permute.xlu0 %364  ;;  %v472_v12 = vpop.permute.xlu1 %471 }
 0x143   : > { %v370_v17 = vpop.permute.xlu0 %369 }
 0x144   : > { %v477_v23 = vpop.permute.xlu1 %476 }
 0x147   : > { %v492_v34 = vpop.permute.xlu0 %491 }
 0x196   : > { %v452_v13 = vpop.f32.mrb[0].mxu0 }
 0x197   : > { %v453_v14 = vadd.f32 %v452_v13, %v365_v11  ;;  %v454_v15 = vpop.f32.mrb[1].mxu0 }
 0x198   : > { %v455_v16 = vadd.f32 %v454_v15, %v365_v11 }
 0x199   : > { %v479_v19 = vmul.f32 %v472_v12, %v453_v14  ;;  %vm463_vm2 = vcmp.gt.f32.partialorder %v453_v14, 0.0 }
 0x19a   : > { %v458_v18 = vpop.f32.mrb[2].mxu0  ;;  %v480_v22 = vmul.f32 %v472_v12, %v455_v16  ;;  %vm464_vm4 = vcmp.gt.f32.partialorder %v455_v16, 0.0 }
 0x19b   : > { %v459_v20 = vadd.f32 %v458_v18, %v370_v17  ;;  %v460_v21 = vpop.f32.mrb[3].mxu0  ;;  %v483_v27 = vsel %vm463_vm2, %v453_v14, %v479_v19 }
 0x19c   : > { %v461_v24 = vadd.f32 %v460_v21, %v370_v17  ;;  %v484_v29 = vsel %vm464_vm4, %v455_v16, %v480_v22 }
 0x19d   : > { %vm465_vm3 = vcmp.gt.f32.partialorder %v459_v20, 0.0  ;;  %v481_v25 = vmul.f32 %v477_v23, %v459_v20 }
 0x19e   : > { %v482_v26 = vmul.f32 %v477_v23, %v461_v24  ;;  %vm466_vm5 = vcmp.gt.f32.partialorder %v461_v24, 0.0 }
 0x19f   : > { %v485_v28 = vsel %vm465_vm3, %v459_v20, %v481_v25 }
 0x1a0   : > { %v486_v30 = vsel %vm466_vm5, %v461_v24, %v482_v26  ;;  %v763_v31 = vpack.c.bf16 %v485_v28, %v483_v27 }
 0x1a1   : > { %v760_v32 = vpack.c.bf16 %v486_v30, %v484_v29 }
 0x1a3   : > { %762 = vmatprep.subr.msk.bf16.mxu1 %vm761_vm7, %v760_v32 }
 0x1a4   : > { %765 = vmatpush1.bf16.msk.msra.mxu1 %vm761_vm7, %v763_v31 }
 0x1a7   : > { %752 = vmatmul.mubr.msk.f32.vlgmr.msra.gmra.mrb[0].mxu1 %vm494_vm8, %v487_v33 }
 0x27a   : > { %v570_v35 = vpop.f32.mrb[0].mxu1 }
 0x27b   : > { %v571_v36 = vadd.f32 %v570_v35, %v492_v34  ;;  %v572_v37 = vpop.f32.mrb[1].mxu1 }
 0x27c   : > { %v573_v38 = vadd.f32 %v572_v37, %v492_v34 }
 0x27d   : > { %575 = vst [vmem:[%s354_s16] sm:$0xff] %v571_v36 }
 0x27e   : > { %576 = vst [vmem:[%s354_s16 + $0x8] sm:$0xff] %v573_v38 }
 0x27f   : > { %1070 = shalt.err (!%p1067_p8)
}
 0x280   : > { %s1071_s11 = scalar_lea.hbm %s1481_s9, 256  ;;  %s1075_s30 = scalar_lea.hbm %s1536_s6, 512 }
 0x281   : > { %p1072_p3 = scmp.ne.s32.totalorder %s1481_s9, %s1071_s11  ;;  %p1076_p0 = scmp.lt.u32.totalorder %s1481_s9, %s1536_s6 }
 0x282   : > { %p1077_p11 = scmp.lt.u32.totalorder %s1075_s30, %s1071_s11  ;;  %p1079_p6 = scmp.lt.u32.totalorder %s1071_s11, %s1481_s9 }
 0x283   : > { %p1073_p12 = pnand %p1072_p3, %p1557_p5 }
 0x284   : > { %p1078_p7 = por %p1077_p11, %p1076_p0 }
 0x285   : > { %p1074_p13 = pneg %p1073_p12 }
 0x286   : > { %p1080_p10 = por %p1079_p6, %p1078_p7 }
 0x288   : > { %p1081_p1 = pnand %p1080_p10, %p1074_p13 }
 0x28a   : > { %1084 = shalt.err (!%p1081_p1)
}
 0x28b   : > { %788 = dma.vmem_to_hbm [thread:$0]  (%p1557_p5), %s1483_s14, 256, %s1481_s9, %s578_s24  }
 0x28c PF: > { %s606_s16 = sand.u32 1, %s1131_s21   ;;  %p1558_p2 = scmp.ne.s32.totalorder %s1553_s13, 0 }
 0x28d   : > { %p1559_p4 = scmp.ge.s32.totalorder %s1151_s26, 2  ;;  %s607_s18 = scalar_lea.sflag [#allocation4], %s606_s16 }
 0x28f   : > { %p811_p9 = pnand %p1559_p4, %p1558_p2 }
 0x291   : > { %1126 = dma.done.wait (!%p811_p9), %s607_s18, 256  }
 0x292   : > { %1128 = vsyncadd (!%p811_p9), %s607_s18, 4294967040  ;;  %s25_s26 = sadd.s32 1, %s1151_s26   ;;  %s1560_s21 = smov %s1135_s22 }
 0x293   : > { %p22_p8 = scmp.ge.s32.totalorder %s25_s26, 4   ;;  %s1561_s22 = smov %s1139_s23 }
 0x294   : > { %s1562_s23 = smov %s1404_s27  ;;  %s1563_s24 = smov %s1147_s25 }
 0x295   : > { %s1564_s25 = smov %s1566_s10  ;;  %24 = sbr.rel (!%p22_p8) target bundleno = 11 (0xb), region = 109 }
 0x29c   :  { %612 = vsyncpa [#allocation3], 1 }
 0x29d   :  { %614 = vsyncpa [#allocation3 + $0x1], 1 }
 0x29e   :  { %615 = vsyncpa [#allocation6], 1 }
 0x29f   :  { %616 = vsyncpa [#allocation9], 1 }
 0x2a0   :  { %617 = vsyncpa [#allocation12], 1 }
 0x2a1   :  { %618 = vsyncpa [#allocation4], 1 }
 0x2a2   :  { %620 = vsyncpa [#allocation4 + $0x1], 1 }

// kernel: tpu_custom_call.1
= control target key start
LH: loop header
LB: loop body
LE: loop exit
PB: predicated region body
PF: predicated region fallthrough
CT: control target
= control target key end

     0   :  { %s1530_s0 = inlined_call_operand.hbm [shape: f32[2,4,256], index: 0, kind: input, shape index: {}]   ;;  %s1531_s1 = inlined_call_operand.hbm [shape: f32[12,4], index: 1, kind: input, shape index: {}]   ;;  %s1532_s2 = inlined_call_operand.hbm [shape: f32[12,1], index: 2, kind: input, shape index: {}]   ;;  %s1533_s3 = inlined_call_operand.hbm [shape: f32[12,1], index: 3, kind: input, shape index: {}]   ;;  %s1534_s4 = inlined_call_operand.hbm [shape: f32[8,12], index: 4, kind: input, shape index: {}]   ;;  %s1535_s5 = inlined_call_operand.hbm [shape: f32[8,1], index: 5, kind: input, shape index: {}]   ;;  %s1536_s6 = inlined_call_operand.hbm [shape: f32[2,8,256], index: 6, kind: output, shape index: {}]  }
   0x1   :  { %1542 = sst [smem:[#allocation19_spill]] %s1531_s1 }
   0x2   :  { %11 = vsyncpa [#allocation3], 0 }
   0x3   :  { %13 = vsyncpa [#allocation3 + $0x1], 0 }
   0x4   :  { %14 = vsyncpa [#allocation6], 0 }
   0x5   :  { %15 = vsyncpa [#allocation9], 0 }
   0x6   :  { %16 = vsyncpa [#allocation12], 0 }
   0x7   :  { %17 = vsyncpa [#allocation4], 0 }
   0x8   :  { %19 = vsyncpa [#allocation4 + $0x1], 0  ;;  %s1200_s21 = smov 0   ;;  %s1202_s22 = smov 0  }
   0x9   :  { %s1204_s23 = smov 0   ;;  %s1206_s24 = smov 0  }
   0xa   :  { %s1208_s25 = smov 0   ;;  %s1210_s26 = smov 0  }
   0xb LB: > { %s1537_s27 = sadd.s32 4294967295, %s1151_s26   ;;  %p728_p0 = scmp.ge.s32.totalorder %s1151_s26, 1  ;;  %s1151_s26 = sphi %s1210_s26, %s25_s26   ;;  %s1147_s25 = sphi %s1208_s25, %s1564_s25   ;;  %s1143_s24 = sphi %s1206_s24, %s1563_s24   ;;  %s1139_s23 = sphi %s1204_s23, %s1562_s23   ;;  %s1135_s22 = sphi %s1202_s22, %s1561_s22   ;;  %s1131_s21 = sphi %s1200_s21, %s1560_s21  }
   0xc   : > { %p1234_p1 = scmp.eq.s32.totalorder %s1537_s27, 0  ;;  %p203_p2 = scmp.lt.s32.totalorder %s1151_s26, 3 }
   0xd   : > { %s1153_s30 = smov [#allocation5]   ;;  %s1154_s9 = smov [#allocation8]  }
   0xe   : > { %s1543_s28 = scalar_select %p1234_p1, 1, 0 }
   0xf   : > { %p1239_p3 = pnand %p728_p0, %p203_p2  ;;  %s215_s7 = sshll.u32 %s1153_s30, 4  ;;  %s1243_s7 = int_to_ptr.vmem [resolvable:$true] %s215_s7 }
  0x10   : > { %s241_s10 = sshll.u32 %s1154_s9, 4  ;;  %s1155_s11 = smov [#allocation7]   ;;  %s1254_s10 = int_to_ptr.vmem [resolvable:$true] %s241_s10 }
  0x11   : > { %s1544_s29 = scalar_select %p1239_p3, 1, 0 }
  0x12   : > { %p790_p4 = pneg %p1239_p3  ;;  %s1256_s12 = sshll.u32 %s1155_s11, 4  ;;  %s229_s12 = int_to_ptr.vmem [resolvable:$true] %s1256_s12 }
  0x13   : > { %s1546_s1 = sld [smem:[#allocation19_spill]] }
  0x14   : > { %p1250_p6 = pnand %p790_p4, %p1234_p1 }
  0x16   : > { %p1266_p8 = pneg %p1250_p6 }
  0x19   : > { %s887_s15 = scalar_lea.hbm %s1546_s1, 256 }
  0x1a   : > { %p888_p7 = scmp.ne.s32.totalorder %s1546_s1, %s887_s15  ;;  %p894_p11 = scmp.lt.u32.totalorder %s887_s15, %s1546_s1 }
  0x1c   : > { %p890_p9 = pnand %p1266_p8, %p888_p7 }
  0x1e   : > { %p891_p10 = pneg %p890_p9 }
  0x20   : > { %p896_p12 = pnand %p894_p11, %p891_p10 }
  0x22   : > { %899 = shalt.err (!%p896_p12)
}
  0x23   : > { %s900_s30 = scalar_lea.vmem %s1243_s7, 256  ;;  %p908_p4 = scmp.lt.s32.totalorder %s1243_s7, %s1243_s7 }
  0x24   : > { %p901_p13 = scmp.ne.s32.totalorder %s1243_s7, %s900_s30  ;;  %p909_p5 = scmp.lt.s32.totalorder %s900_s30, %s900_s30 }
  0x26   : > { %p903_p0 = pnand %p901_p13, %p1266_p8  ;;  %p910_p7 = por %p909_p5, %p908_p4 }
  0x28   : > { %p904_p2 = pneg %p903_p0 }
  0x2a   : > { %p911_p9 = pnand %p910_p7, %p904_p2 }
  0x2c   : > { %914 = shalt.err (!%p911_p9)
}
  0x2d   : > { %s1156_s9 = smov 128   ;;  %s1157_s11 = smov 8  }
  0x2e   : > { %793 = dma.hbm_to_vmem [thread:$0]  (!%p1250_p6), %s1546_s1, 256, %s1243_s7, [#allocation6], %s1156_s9, %s1156_s9, %s1157_s11  }
  0x2f   : > { %s915_s17 = scalar_lea.hbm %s1533_s3, 256 }
  0x30   : > { %p916_p5 = scmp.ne.s32.totalorder %s1533_s3, %s915_s17  ;;  %p922_p12 = scmp.lt.u32.totalorder %s915_s17, %s1533_s3 }
  0x32   : > { %p918_p10 = pnand %p916_p5, %p1266_p8 }
  0x34   : > { %p919_p11 = pneg %p918_p10 }
  0x36   : > { %p924_p13 = pnand %p922_p12, %p919_p11 }
  0x38   : > { %927 = shalt.err (!%p924_p13)
}
  0x39   : > { %s928_s7 = scalar_lea.vmem %s1254_s10, 256  ;;  %p936_p7 = scmp.lt.s32.totalorder %s1254_s10, %s1254_s10 }
  0x3a   : > { %p929_p0 = scmp.ne.s32.totalorder %s1254_s10, %s928_s7  ;;  %p937_p9 = scmp.lt.s32.totalorder %s928_s7, %s928_s7 }
  0x3c   : > { %p931_p2 = pnand %p929_p0, %p1266_p8  ;;  %p938_p5 = por %p937_p9, %p936_p7 }
  0x3e   : > { %p932_p4 = pneg %p931_p2 }
  0x40   : > { %p939_p10 = pnand %p938_p5, %p932_p4 }
  0x42   : > { %942 = shalt.err (!%p939_p10)
}
  0x43   : > { %799 = dma.hbm_to_vmem [thread:$0]  (!%p1250_p6), %s1533_s3, 256, %s1254_s10, [#allocation9], %s1156_s9, %s1156_s9, %s1157_s11  }
  0x44   : > { %s943_s16 = scalar_lea.hbm %s1532_s2, 256 }
  0x45   : > { %p944_p11 = scmp.ne.s32.totalorder %s1532_s2, %s943_s16  ;;  %p950_p0 = scmp.lt.u32.totalorder %s943_s16, %s1532_s2 }
  0x47   : > { %p946_p12 = pnand %p944_p11, %p1266_p8 }
  0x49   : > { %p947_p13 = pneg %p946_p12 }
  0x4b   : > { %p952_p2 = pnand %p950_p0, %p947_p13 }
  0x4d   : > { %955 = shalt.err (!%p952_p2)
}
  0x4e   : > { %s956_s7 = scalar_lea.vmem %s229_s12, 256  ;;  %p964_p5 = scmp.lt.s32.totalorder %s229_s12, %s229_s12 }
  0x4f   : > { %p957_p4 = scmp.ne.s32.totalorder %s229_s12, %s956_s7  ;;  %p965_p10 = scmp.lt.s32.totalorder %s956_s7, %s956_s7 }
  0x51   : > { %p959_p7 = pnand %p957_p4, %p1266_p8  ;;  %p966_p3 = por %p965_p10, %p964_p5 }
  0x53   : > { %p960_p9 = pneg %p959_p7 }
  0x55   : > { %p967_p1 = pnand %p966_p3, %p960_p9 }
  0x57   : > { %970 = shalt.err (!%p967_p1)
}
  0x58   : > { %796 = dma.hbm_to_vmem [thread:$0]  (!%p1250_p6), %s1532_s2, 256, %s229_s12, [#allocation6], %s1156_s9, %s1156_s9, %s1157_s11  }
  0x59   : > { %s1158_s13 = smov [#allocation10]   ;;  %s1159_s15 = smov [#allocation11]  }
  0x5a   : > { %s255_s14 = sshll.u32 %s1158_s13, 4  ;;  %s266_s16 = sshll.u32 %s1159_s15, 4  ;;  %s256_s14 = int_to_ptr.vmem [resolvable:$true] %s255_s14  ;;  %s267_s16 = int_to_ptr.vmem [resolvable:$true] %s266_s16 }
  0x5b   : > { %s971_s20 = scalar_lea.hbm %s1534_s4, 128 }
  0x5c   : > { %p972_p1 = scmp.ne.s32.totalorder %s1534_s4, %s971_s20  ;;  %p978_p12 = scmp.lt.u32.totalorder %s971_s20, %s1534_s4 }
  0x5e   : > { %p974_p3 = pnand %p972_p1, %p1266_p8 }
  0x60   : > { %p975_p11 = pneg %p974_p3 }
  0x62   : > { %p980_p13 = pnand %p978_p12, %p975_p11 }
  0x64   : > { %983 = shalt.err (!%p980_p13)
}
  0x65   : > { %s984_s12 = scalar_lea.vmem %s256_s14, 128  ;;  %p992_p7 = scmp.lt.s32.totalorder %s256_s14, %s256_s14 }
  0x66   : > { %p985_p0 = scmp.ne.s32.totalorder %s256_s14, %s984_s12  ;;  %p993_p9 = scmp.lt.s32.totalorder %s984_s12, %s984_s12 }
  0x68   : > { %p987_p2 = pnand %p985_p0, %p1266_p8  ;;  %p994_p5 = por %p993_p9, %p992_p7 }
  0x6a   : > { %p988_p4 = pneg %p987_p2 }
  0x6c   : > { %p995_p10 = pnand %p994_p5, %p988_p4 }
  0x6e   : > { %998 = shalt.err (!%p995_p10)
}
  0x6f   : > { %802 = dma.hbm_to_vmem [thread:$0]  (!%p1250_p6), %s1534_s4, 128, %s256_s14, [#allocation9]  }
  0x70   : > { %s999_s13 = scalar_lea.hbm %s1535_s5, 128 }
  0x71   : > { %p1000_p1 = scmp.ne.s32.totalorder %s1535_s5, %s999_s13  ;;  %p1006_p12 = scmp.lt.u32.totalorder %s999_s13, %s1535_s5 }
  0x73   : > { %p1002_p3 = pnand %p1000_p1, %p1266_p8 }
  0x75   : > { %p1003_p11 = pneg %p1002_p3 }
  0x77   : > { %p1008_p13 = pnand %p1006_p12, %p1003_p11 }
  0x79   : > { %1011 = shalt.err (!%p1008_p13)
}
  0x7a   : > { %s1012_s30 = scalar_lea.vmem %s267_s16, 128  ;;  %p1020_p7 = scmp.lt.s32.totalorder %s267_s16, %s267_s16 }
  0x7b   : > { %p1013_p0 = scmp.ne.s32.totalorder %s267_s16, %s1012_s30  ;;  %p1021_p9 = scmp.lt.s32.totalorder %s1012_s30, %s1012_s30 }
  0x7d   : > { %p1015_p2 = pnand %p1013_p0, %p1266_p8  ;;  %p1022_p5 = por %p1021_p9, %p1020_p7 }
  0x7f   : > { %p1016_p4 = pneg %p1015_p2 }
  0x81   : > { %p1023_p10 = pnand %p1022_p5, %p1016_p4 }
  0x83   : > { %1026 = shalt.err (!%p1023_p10)
}
  0x84   : > { %805 = dma.hbm_to_vmem [thread:$0]  (!%p1250_p6), %s1535_s5, 128, %s267_s16, [#allocation12]  }
  0x85   : > { %s727_s18 = sadd.s32 4294967294, %s1151_s26   ;;  %s37_s10 = sadd.s32 1, %s1147_s25 }
  0x86   : > { %s46_s8 = sadd.s32 1, %s1139_s23  ;;  %p39_p8 = scmp.ge.s32.totalorder %s37_s10, 2 }
  0x87   : > { %p53_p1 = scmp.ne.s32.totalorder %s1139_s23, %s1135_s22  ;;  %p54_p3 = scmp.eq.s32.totalorder %s1151_s26, 0 }
  0x88   : > { %p59_p11 = scmp.ne.s32.totalorder %s1135_s22, %s1131_s21  ;;  %s1566_s10 = smov (%p39_p8, %s37_s10), 0 }
  0x89   : > { %p1384_p12 = por %p54_p3, %p53_p1  ;;  %p1549_p13 = scmp.ne.s32.totalorder %s1543_s28, 0 }
  0x8a   : > { %s41_s9 = ssub.s32 %s1147_s25, %s1566_s10  ;;  %s1551_s11 = sadd.s32 4294967295, %s1151_s26  }
  0x8b   : > { %p1390_p6 = por %p1549_p13, %p59_p11  ;;  %p190_p0 = scmp.eq.s32.totalorder %s1551_s11, 1 }
  0x8c   : > { %p44_p2 = scmp.eq.s32.totalorder %s41_s9, 0  ;;  %p196_p4 = scmp.eq.s32.totalorder %s727_s18, 1 }
  0x8d   : > { %p1398_p7 = por %p190_p0, %p53_p1  ;;  %p819_p9 = scmp.lt.s32.totalorder %s1151_s26, 2 }
  0x8e   : > { %s1404_s27 = scalar_select %p44_p2, %s1139_s23, %s46_s8  }
  0x8f   : > { %s1552_s1 = scalar_select %p1398_p7, 1, 0 }
  0x90   : > { %p1406_p5 = por %p196_p4, %p59_p11  ;;  %s277_s15 = sand.u32 1, %s1139_s23  }
  0x91   : > { %s735_s17 = sshll.u32 %s277_s15, 3  ;;  %s758_s19 = sshll.u32 %s1147_s25, 7 }
  0x92   : > { %s1553_s13 = scalar_select %p1406_p5, 1, 0 }
  0x93   : > { %s1415_s14 = scalar_lea.hbm %s1530_s0, %s758_s19  ;;  %s281_s7 = scalar_lea.vmem [#allocation2], %s735_s17 }
  0x94   : > { %s291_s18 = sshll.u32 %s281_s7, 4  ;;  %p1421_p10 = pnand %p819_p9, %p1384_p12  ;;  %s1417_s18 = int_to_ptr.vmem [resolvable:$true] %s291_s18 }
  0x95   : > { %s278_s9 = scalar_lea.sflag [#allocation3], %s277_s15  ;;  %s1027_s11 = scalar_lea.hbm %s1415_s14, 128 }
  0x96   : > { %p1028_p8 = scmp.ne.s32.totalorder %s1415_s14, %s1027_s11  ;;  %p1029_p1 = pneg %p1421_p10 }
  0x97   : > { %s1032_s20 = scalar_lea.hbm %s1530_s0, 256  ;;  %p1033_p12 = scmp.lt.u32.totalorder %s1415_s14, %s1530_s0 }
  0x98   : > { %p1030_p3 = pnand %p1029_p1, %p1028_p8  ;;  %p1034_p13 = scmp.lt.u32.totalorder %s1032_s20, %s1027_s11 }
  0x99   : > { %p1036_p2 = scmp.lt.u32.totalorder %s1027_s11, %s1415_s14 }
  0x9a   : > { %p1031_p11 = pneg %p1030_p3  ;;  %p1035_p0 = por %p1034_p13, %p1033_p12 }
  0x9c   : > { %p1037_p4 = por %p1036_p2, %p1035_p0 }
  0x9e   : > { %p1038_p9 = pnand %p1037_p4, %p1031_p11 }
  0xa0   : > { %1041 = shalt.err (!%p1038_p9)
}
  0xa1   : > { %s1042_s15 = scalar_lea.vmem %s1417_s18, 128  ;;  %s1160_s7 = smov [#allocation2]  }
  0xa2   : > { %p1043_p8 = scmp.ne.s32.totalorder %s1417_s18, %s1042_s15  ;;  %s1047_s17 = sshll.u32 %s1160_s7, 4  ;;  %s1048_s17 = int_to_ptr.vmem [resolvable:$false] %s1047_s17 }
  0xa3   : > { %s1049_s19 = scalar_lea.vmem %s1048_s17, 256  ;;  %p1050_p7 = scmp.lt.s32.totalorder %s1417_s18, %s1048_s17 }
  0xa4   : > { %p1045_p3 = pnand %p1043_p8, %p1029_p1  ;;  %p1051_p12 = scmp.lt.s32.totalorder %s1049_s19, %s1042_s15 }
  0xa6   : > { %p1046_p5 = pneg %p1045_p3  ;;  %p1052_p13 = por %p1051_p12, %p1050_p7 }
  0xa8   : > { %p1053_p0 = pnand %p1052_p13, %p1046_p5 }
  0xaa   : > { %1056 = shalt.err (!%p1053_p0)
}
  0xab   : > { %809 = dma.hbm_to_vmem [thread:$0]  (!%p1421_p10), %s1415_s14, 128, %s1417_s18, %s278_s9  }
  0xac   : > { %p1555_p11 = scmp.ne.s32.totalorder %s1544_s29, 0 }
  0xad   : > { %s1453_s11 = sand.u32 (!%p1555_p11), 1, %s1135_s22  }
  0xae   : > { %300 = sbr.rel (%p1555_p11) target bundleno = 652 (0x28c), region = 44  ;;  %s739_s20 = sshll.u32 (!%p1555_p11), %s1453_s11, 3 }
  0xaf   : > { %s303_s12 = scalar_lea.sflag (!%p1555_p11), [#allocation3], %s1453_s11  ;;  %s306_s30 = scalar_lea.vmem (!%p1555_p11), [#allocation2], %s739_s20 }
  0xb5   : > { %1110 = dma.done.wait (%p1390_p6), %s303_s12, 128  }
  0xb6   : > { %1112 = vsyncadd (%p1390_p6), %s303_s12, 4294967168  ;;  %p1556_p7 = scmp.ne.s32.totalorder %s1543_s28, 0 }
  0xb8   : > { %1114 = dma.done.wait (%p1556_p7), [#allocation6], 512  }
  0xb9   : > { %1116 = vsyncadd (%p1556_p7), [#allocation6], 4294966784 }
  0xba   : > { %1118 = dma.done.wait (%p1556_p7), [#allocation9], 384  }
  0xbb   : > { %1120 = vsyncadd (%p1556_p7), [#allocation9], 4294966912 }
  0xbc   : > { %1122 = dma.done.wait (%p1556_p7), [#allocation12], 128  }
  0xbd   : > { %1124 = vsyncadd (%p1556_p7), [#allocation12], 4294967168  ;;  %v1161_v0 = vmov 0.0   ;;  %v1162_v1 = vmov 0   ;;  %v357_v2 = vld [vmem:[%s306_s30] sm:$0xff]  ;;  %vm381_vm0 = vcmask 1043456  }
  0xbe   : > { %450 = vmatprep.mubr.f32.mxu0 %v1161_v0  ;;  %884 = vset.pattern.permute.xlu0 %v1162_v1  ;;  %v373_v3 = vcombine.high %v357_v2, %v357_v2  ;;  %v360_v4 = vld [vmem:[#allocation7] sm:$0xff]  ;;  %v467_v5 = vld [vmem:[#allocation8] sm:$0xff]  ;;  %vm374_vm1 = vcmask 31744   ;;  %v361_v7 = vld [vmem:[#allocation7 + $0x8] sm:$0xf]  ;;  %vm1163_vm6 = vmmov 1  }
  0xbf   : > { %885 = vset.pattern.permute.xlu1 %v1162_v1  ;;  %568 = vmatprep.mubr.f32.mxu1 %v1161_v0  ;;  %v358_v6 = vld [vmem:[#allocation5] sm:$0xff]  ;;  %v468_v8 = vld [vmem:[#allocation8 + $0x8] sm:$0xf]  ;;  %v488_v10 = vld [vmem:[#allocation11] sm:$0xff]  ;;  %vm494_vm8 = vcmask 97280   ;;  %s745_s28 = sshll.u32 %s1453_s11, 4 }
  0xc0   : > { %364 = vperm.xlu0 %884, %v360_v4   ;;  %471 = vperm.xlu1 %885, %v467_v5   ;;  %v359_v9 = vld [vmem:[#allocation5 + $0x8] sm:$0xf]  ;;  %vm761_vm7 = vmpackc.low %vm381_vm0, %vm1163_vm6  ;;  %v487_v33 = vld [vmem:[#allocation10] sm:$0xff]  ;;  %s759_s29 = sshll.u32 %s1143_s24, 8  ;;  %s354_s16 = scalar_lea.vmem [#allocation13], %s745_s28 }
  0xc1   : > { %746 = vmatprep.subr.msk.mxu0 %vm381_vm0, %v373_v3  ;;  %s594_s14 = sshll.u32 %s354_s16, 4  ;;  %s1481_s9 = scalar_lea.hbm %s1536_s6, %s759_s29  ;;  %s1483_s14 = int_to_ptr.vmem [resolvable:$true] %s594_s14 }
  0xc2   : > { %747 = vmatpush1.msk.msra.mxu0 %vm381_vm0, %v357_v2  ;;  %s578_s24 = scalar_lea.sflag [#allocation4], %s1453_s11  ;;  %s1057_s15 = scalar_lea.vmem %s1483_s14, 256 }
  0xc3   : > { %748 = vmatmul.mubr.msk.f32.vlgmr.msra.gmra.mrb[0].mxu0 %vm374_vm1, %v358_v6  ;;  %p1058_p6 = scmp.ne.s32.totalorder %s1483_s14, %s1057_s15  ;;  %p1557_p5 = scmp.ne.s32.totalorder %s1552_s1, 0 }
  0xc4   : > { %456 = vmatprep.mubr.f32.mxu0 %v1161_v0  ;;  %369 = vperm.xlu0 %884, %v361_v7   ;;  %s1164_s7 = smov [#allocation13]  }
  0xc5   : > { %476 = vperm.xlu1 %885, %v468_v8   ;;  %p1059_p10 = pnand %p1058_p6, %p1557_p5  ;;  %s1061_s17 = sshll.u32 %s1164_s7, 4  ;;  %s1062_s17 = int_to_ptr.vmem [resolvable:$false] %s1061_s17 }
  0xc6   : > { %s1063_s19 = scalar_lea.vmem %s1062_s17, 512  ;;  %p1064_p2 = scmp.lt.s32.totalorder %s1483_s14, %s1062_s17 }
  0xc7   : > { %749 = vmatmul.mubr.msk.f32.gmra.mrb[2].mxu0 %vm374_vm1, %v359_v9  ;;  %p1060_p1 = pneg %p1059_p10  ;;  %p1065_p4 = scmp.lt.s32.totalorder %s1063_s19, %s1057_s15 }
  0xc8   : > { %491 = vperm.xlu0 %884, %v488_v10  }
  0xc9   : > { %p1066_p9 = por %p1065_p4, %p1064_p2 }
  0xcb   : > { %p1067_p8 = pnand %p1066_p9, %p1060_p1 }
 0x13f   : > { %v365_v11 = vpop.permute.xlu0 %364  ;;  %v472_v12 = vpop.permute.xlu1 %471 }
 0x143   : > { %v370_v17 = vpop.permute.xlu0 %369 }
 0x144   : > { %v477_v23 = vpop.permute.xlu1 %476 }
 0x147   : > { %v492_v34 = vpop.permute.xlu0 %491 }
 0x196   : > { %v452_v13 = vpop.f32.mrb[0].mxu0 }
 0x197   : > { %v453_v14 = vadd.f32 %v452_v13, %v365_v11  ;;  %v454_v15 = vpop.f32.mrb[1].mxu0 }
 0x198   : > { %v455_v16 = vadd.f32 %v454_v15, %v365_v11 }
 0x199   : > { %v479_v19 = vmul.f32 %v472_v12, %v453_v14  ;;  %vm463_vm2 = vcmp.gt.f32.partialorder %v453_v14, 0.0 }
 0x19a   : > { %v458_v18 = vpop.f32.mrb[2].mxu0  ;;  %v480_v22 = vmul.f32 %v472_v12, %v455_v16  ;;  %vm464_vm4 = vcmp.gt.f32.partialorder %v455_v16, 0.0 }
 0x19b   : > { %v459_v20 = vadd.f32 %v458_v18, %v370_v17  ;;  %v460_v21 = vpop.f32.mrb[3].mxu0  ;;  %v483_v27 = vsel %vm463_vm2, %v453_v14, %v479_v19 }
 0x19c   : > { %v461_v24 = vadd.f32 %v460_v21, %v370_v17  ;;  %v484_v29 = vsel %vm464_vm4, %v455_v16, %v480_v22 }
 0x19d   : > { %vm465_vm3 = vcmp.gt.f32.partialorder %v459_v20, 0.0  ;;  %v481_v25 = vmul.f32 %v477_v23, %v459_v20 }
 0x19e   : > { %v482_v26 = vmul.f32 %v477_v23, %v461_v24  ;;  %vm466_vm5 = vcmp.gt.f32.partialorder %v461_v24, 0.0 }
 0x19f   : > { %v485_v28 = vsel %vm465_vm3, %v459_v20, %v481_v25 }
 0x1a0   : > { %v486_v30 = vsel %vm466_vm5, %v461_v24, %v482_v26  ;;  %v763_v31 = vpack.c.bf16 %v485_v28, %v483_v27 }
 0x1a1   : > { %v760_v32 = vpack.c.bf16 %v486_v30, %v484_v29 }
 0x1a3   : > { %762 = vmatprep.subr.msk.bf16.mxu1 %vm761_vm7, %v760_v32 }
 0x1a4   : > { %765 = vmatpush1.bf16.msk.msra.mxu1 %vm761_vm7, %v763_v31 }
 0x1a7   : > { %752 = vmatmul.mubr.msk.f32.vlgmr.msra.gmra.mrb[0].mxu1 %vm494_vm8, %v487_v33 }
 0x27a   : > { %v570_v35 = vpop.f32.mrb[0].mxu1 }
 0x27b   : > { %v571_v36 = vadd.f32 %v570_v35, %v492_v34  ;;  %v572_v37 = vpop.f32.mrb[1].mxu1 }
 0x27c   : > { %v573_v38 = vadd.f32 %v572_v37, %v492_v34 }
 0x27d   : > { %575 = vst [vmem:[%s354_s16] sm:$0xff] %v571_v36 }
 0x27e   : > { %576 = vst [vmem:[%s354_s16 + $0x8] sm:$0xff] %v573_v38 }
 0x27f   : > { %1070 = shalt.err (!%p1067_p8)
}
 0x280   : > { %s1071_s11 = scalar_lea.hbm %s1481_s9, 256  ;;  %s1075_s30 = scalar_lea.hbm %s1536_s6, 512 }
 0x281   : > { %p1072_p3 = scmp.ne.s32.totalorder %s1481_s9, %s1071_s11  ;;  %p1076_p0 = scmp.lt.u32.totalorder %s1481_s9, %s1536_s6 }
 0x282   : > { %p1077_p11 = scmp.lt.u32.totalorder %s1075_s30, %s1071_s11  ;;  %p1079_p6 = scmp.lt.u32.totalorder %s1071_s11, %s1481_s9 }
 0x283   : > { %p1073_p12 = pnand %p1072_p3, %p1557_p5 }
 0x284   : > { %p1078_p7 = por %p1077_p11, %p1076_p0 }
 0x285   : > { %p1074_p13 = pneg %p1073_p12 }
 0x286   : > { %p1080_p10 = por %p1079_p6, %p1078_p7 }
 0x288   : > { %p1081_p1 = pnand %p1080_p10, %p1074_p13 }
 0x28a   : > { %1084 = shalt.err (!%p1081_p1)
}
 0x28b   : > { %788 = dma.vmem_to_hbm [thread:$0]  (%p1557_p5), %s1483_s14, 256, %s1481_s9, %s578_s24  }
 0x28c PF: > { %s606_s16 = sand.u32 1, %s1131_s21   ;;  %p1558_p2 = scmp.ne.s32.totalorder %s1553_s13, 0 }
 0x28d   : > { %p1559_p4 = scmp.ge.s32.totalorder %s1151_s26, 2  ;;  %s607_s18 = scalar_lea.sflag [#allocation4], %s606_s16 }
 0x28f   : > { %p811_p9 = pnand %p1559_p4, %p1558_p2 }
 0x291   : > { %1126 = dma.done.wait (!%p811_p9), %s607_s18, 256  }
 0x292   : > { %1128 = vsyncadd (!%p811_p9), %s607_s18, 4294967040  ;;  %s25_s26 = sadd.s32 1, %s1151_s26   ;;  %s1560_s21 = smov %s1135_s22 }
 0x293   : > { %p22_p8 = scmp.ge.s32.totalorder %s25_s26, 4   ;;  %s1561_s22 = smov %s1139_s23 }
 0x294   : > { %s1562_s23 = smov %s1404_s27  ;;  %s1563_s24 = smov %s1147_s25 }
 0x295   : > { %s1564_s25 = smov %s1566_s10  ;;  %24 = sbr.rel (!%p22_p8) target bundleno = 11 (0xb), region = 109 }
 0x29c   :  { %612 = vsyncpa [#allocation3], 1 }
 0x29d   :  { %614 = vsyncpa [#allocation3 + $0x1], 1 }
 0x29e   :  { %615 = vsyncpa [#allocation6], 1 }
 0x29f   :  { %616 = vsyncpa [#allocation9], 1 }
 0x2a0   :  { %617 = vsyncpa [#allocation12], 1 }
 0x2a1   :  { %618 = vsyncpa [#allocation4], 1 }
 0x2a2   :  { %620 = vsyncpa [#allocation4 + $0x1], 1 }

</bundles_post_ra>
